<compile_context>
chip_gen: v7x
topology: tpu7x:2x2x1
jax: 0.10.0
libtpu: 0.0.40
codegen_flags: <defaults>
</compile_context>

<pallas_src>
import functools

import jax
import jax.numpy as jnp
from jax.experimental import pallas as pl
from jax.experimental.pallas import tpu as pltpu


def _mlp_kernel(x_ref,
                w0_ref, b0_ref,
                w1_ref, b1_ref,
                w2_ref, b2_ref,
                w3_ref, b3_ref,
                o_ref):
    """Fused 4-layer MLP on one batch tile: (Linear+ReLU) x3 then Linear."""
    h = jnp.dot(x_ref[...], w0_ref[...],
                preferred_element_type=jnp.float32) + b0_ref[...]
    h = jnp.maximum(h, 0.0).astype(w1_ref.dtype)
    h = jnp.dot(h, w1_ref[...],
                preferred_element_type=jnp.float32) + b1_ref[...]
    h = jnp.maximum(h, 0.0).astype(w2_ref.dtype)
    h = jnp.dot(h, w2_ref[...],
                preferred_element_type=jnp.float32) + b2_ref[...]
    h = jnp.maximum(h, 0.0).astype(w3_ref.dtype)
    o = jnp.dot(h, w3_ref[...],
                preferred_element_type=jnp.float32) + b3_ref[...]
    # Final layer is lane-padded (128) in VMEM only; store just the real
    # output columns -> narrow, contiguous HBM writeback.
    o_ref[...] = o[:, :o_ref.shape[1]].astype(o_ref.dtype)


def _round_up(n, m):
    return ((n + m - 1) // m) * m


@functools.partial(
    jax.jit, static_argnames=("input_dim", "output_dim", "use_bf16", "tm_target"))
def dimension_adaptive_forward(x, params, *, input_dim, output_dim,
                               use_bf16=True, tm_target=512):
    """JAX/Pallas equivalent of DimensionAdaptiveNetwork.forward."""
    # ---- glue: 1-D -> 2-D promotion, feature pad/truncate (module semantics) ----
    if x.ndim == 1:
        x = x[None, :]
    b, f = x.shape
    if f > input_dim:
        x = x[:, :input_dim]
    elif f < input_dim:
        x = jnp.pad(x, ((0, 0), (0, input_dim - f)))

    (w0, b0), (w1, b1), (w2, b2), (w3, b3) = params

    # Pad the final layer to a multiple of 128 lanes for a clean MXU shape.
    # This padding lives only in VMEM; the HBM output stays (b, output_dim).
    n_pad = _round_up(max(output_dim, 128), 128)
    if n_pad != output_dim:
        w3 = jnp.pad(w3, ((0, 0), (0, n_pad - output_dim)))
        b3 = jnp.pad(b3, ((0, 0), (0, n_pad - output_dim)))

    # bf16 matmul inputs (f32 accumulation); biases stay f32 so the bias+ReLU
    # epilogue runs in f32 on the VPU (needed on v5e, harmless on v6e/v7x).
    cdt = jnp.bfloat16 if use_bf16 else jnp.float32
    x = x.astype(cdt)
    w0, w1, w2, w3 = (w.astype(cdt) for w in (w0, w1, w2, w3))
    b0, b1, b2, b3 = (bb.astype(jnp.float32) for bb in (b0, b1, b2, b3))

    # ---- batch tiling: no batch pad, ragged last tile is masked by Pallas ----
    align = 16 if use_bf16 else 8           # bf16 sublane packing wants x16
    if b >= 2 * tm_target:
        tm = tm_target                       # big batches: 512-row tiles
    elif b > align:
        tm = _round_up((b + 1) // 2, align)  # >=2 tiles: megacore + DMA overlap
    else:
        tm = align                           # tiny batch: single aligned tile
    grid = pl.cdiv(b, tm)

    in_arrays = (x, w0, b0, w1, b1, w2, b2, w3, b3)

    def _resident(shape):
        # full-array block, same block every grid step -> DMA'd once, stays in VMEM
        # TODO(synk): pipeline_mode=pl.Buffered(1) would single-buffer these
        # constant blocks; negligible saving at hidden_dim=128, revisit if it grows.
        return pl.BlockSpec(shape, lambda i: (0,) * len(shape))

    in_specs = [pl.BlockSpec((tm, input_dim), lambda i: (i, 0))]
    in_specs += [_resident(a.shape) for a in in_arrays[1:]]
    out_specs = pl.BlockSpec((tm, output_dim), lambda i: (i, 0))

    # Honest VMEM budget: double-buffered x/out tiles + double-buffered resident
    # weights + f32 intermediate activations + margin (well under v7x's 64 MiB).
    itemsize = 2 if use_bf16 else 4
    tile_bytes = tm * input_dim * itemsize + tm * output_dim * 4
    inter_bytes = 3 * tm * n_pad * 4
    weight_bytes = sum(int(a.size) * a.dtype.itemsize for a in in_arrays[1:])
    vmem_limit = int(2 * tile_bytes + 2 * weight_bytes + inter_bytes + (4 << 20))
    vmem_limit = min(max(vmem_limit, 8 << 20), 48 << 20)

    out = pl.pallas_call(
        _mlp_kernel,
        out_shape=jax.ShapeDtypeStruct((b, output_dim), jnp.float32),
        grid=(grid,),
        in_specs=in_specs,
        out_specs=out_specs,
        compiler_params=pltpu.CompilerParams(
            dimension_semantics=("parallel",),   # megacore: shard batch tiles
            vmem_limit_bytes=vmem_limit,
        ),
    )(*in_arrays)
    # TODO(synk): expose a bf16 out_shape option if the consumer tolerates it
    # (halves the writeback on v7x); kept f32 to match the PyTorch module.
    return out


def init_params(key, input_dim, output_dim, hidden_dim=128):
    """Xavier-uniform weights (stored as (in, out)), zero biases."""
    dims = [(input_dim, hidden_dim),
            (hidden_dim, hidden_dim),
            (hidden_dim, hidden_dim // 2),
            (hidden_dim // 2, output_dim)]
    params = []
    for (fan_in, fan_out) in dims:
        key, sub = jax.random.split(key)
        bound = (6.0 / (fan_in + fan_out)) ** 0.5
        w = jax.random.uniform(sub, (fan_in, fan_out), jnp.float32,
                               minval=-bound, maxval=bound)
        bias = jnp.zeros((1, fan_out), jnp.float32)  # 2-D for clean VMEM broadcast
        params.append((w, bias))
    return params


def reference_forward(x, params, input_dim):
    """Pure-JAX reference of the same forward pass."""
    if x.ndim == 1:
        x = x[None, :]
    b, f = x.shape
    if f < input_dim:
        x = jnp.concatenate(
            [x, jnp.zeros((b, input_dim - f), dtype=x.dtype)], axis=-1)
    elif f > input_dim:
        x = x[:, :input_dim]
    (w0, b0), (w1, b1), (w2, b2), (w3, b3) = params
    h = jax.nn.relu(x @ w0 + b0)
    h = jax.nn.relu(h @ w1 + b1)
    h = jax.nn.relu(h @ w2 + b2)
    return h @ w3 + b3


if __name__ == "__main__":
    INPUT_DIM = 20
    OUTPUT_DIM = 6
    HIDDEN_DIM = 128

    key = jax.random.PRNGKey(0)
    key, pkey, xkey, x1key, x2key = jax.random.split(key, 5)

    params = init_params(pkey, INPUT_DIM, OUTPUT_DIM, HIDDEN_DIM)

    # (1) small batch, narrower features than input_dim (exercises zero-padding)
    x_small = jax.random.normal(xkey, (2, 16), jnp.float32)
    out_small = jax.block_until_ready(dimension_adaptive_forward(
        x_small, params, input_dim=INPUT_DIM, output_dim=OUTPUT_DIM,
        use_bf16=False))
    ref_small = reference_forward(x_small, params, INPUT_DIM)
    assert out_small.shape == (2, OUTPUT_DIM), out_small.shape
    assert jnp.allclose(out_small, ref_small, atol=1e-3, rtol=1e-3), (
        float(jnp.max(jnp.abs(out_small - ref_small))))

    # (2) 1-D input, wider than input_dim (exercises promotion + truncation)
    x_1d = jax.random.normal(x1key, (24,), jnp.float32)
    out_1d = jax.block_until_ready(dimension_adaptive_forward(
        x_1d, params, input_dim=INPUT_DIM, output_dim=OUTPUT_DIM,
        use_bf16=False))
    ref_1d = reference_forward(x_1d, params, INPUT_DIM)
    assert out_1d.shape == (1, OUTPUT_DIM), out_1d.shape
    assert jnp.allclose(out_1d, ref_1d, atol=1e-3, rtol=1e-3), (
        float(jnp.max(jnp.abs(out_1d - ref_1d))))

    # (3) larger batch: 2-tile grid with a ragged (masked) final tile, f32 path
    x_big = jax.random.normal(x2key, (300, 20), jnp.float32)
    out_big = jax.block_until_ready(dimension_adaptive_forward(
        x_big, params, input_dim=INPUT_DIM, output_dim=OUTPUT_DIM,
        use_bf16=False))
    ref_big = reference_forward(x_big, params, INPUT_DIM)
    assert out_big.shape == (300, OUTPUT_DIM), out_big.shape
    assert jnp.allclose(out_big, ref_big, atol=1e-3, rtol=1e-3), (
        float(jnp.max(jnp.abs(out_big - ref_big))))

    # (4) default bf16 matmul-input path (f32 accumulation); loose numerical check
    out_bf16 = jax.block_until_ready(dimension_adaptive_forward(
        x_big, params, input_dim=INPUT_DIM, output_dim=OUTPUT_DIM))
    assert out_bf16.shape == (300, OUTPUT_DIM), out_bf16.shape
    assert bool(jnp.all(jnp.isfinite(out_bf16)))
    assert float(jnp.max(jnp.abs(out_bf16 - ref_big))) < 0.5

    print("KERNEL_OK")
</pallas_src>

<mosaic_0001>
module attributes {stable_mosaic.version = 11 : i64} {
  func.func @_mlp_kernel(%arg0: i32, %arg1: memref<8x20xf32, #tpu.memory_space<vmem>>, %arg2: memref<20x128xf32, #tpu.memory_space<vmem>>, %arg3: memref<1x128xf32, #tpu.memory_space<vmem>>, %arg4: memref<128x128xf32, #tpu.memory_space<vmem>>, %arg5: memref<1x128xf32, #tpu.memory_space<vmem>>, %arg6: memref<128x64xf32, #tpu.memory_space<vmem>>, %arg7: memref<1x64xf32, #tpu.memory_space<vmem>>, %arg8: memref<64x128xf32, #tpu.memory_space<vmem>>, %arg9: memref<1x128xf32, #tpu.memory_space<vmem>>, %arg10: memref<8x6xf32, #tpu.memory_space<vmem>>) attributes {dimension_semantics = [#tpu.dimension_semantics<parallel>], iteration_bounds = array<i64: 1>, scalar_prefetch = 0 : i64, scratch_operands = 0 : i64, tpu.core_type = #tpu.core_type<tc>, window_params = [{transform_indices = @transform_0, window_bounds = array<i64: 8, 20>}, {pipeline_mode = #tpu.pipeline_mode<synchronous>, transform_indices = @transform_1, window_bounds = array<i64: 20, 128>}, {pipeline_mode = #tpu.pipeline_mode<synchronous>, transform_indices = @transform_2, window_bounds = array<i64: 1, 128>}, {pipeline_mode = #tpu.pipeline_mode<synchronous>, transform_indices = @transform_3, window_bounds = array<i64: 128, 128>}, {pipeline_mode = #tpu.pipeline_mode<synchronous>, transform_indices = @transform_4, window_bounds = array<i64: 1, 128>}, {pipeline_mode = #tpu.pipeline_mode<synchronous>, transform_indices = @transform_5, window_bounds = array<i64: 128, 64>}, {pipeline_mode = #tpu.pipeline_mode<synchronous>, transform_indices = @transform_6, window_bounds = array<i64: 1, 64>}, {pipeline_mode = #tpu.pipeline_mode<synchronous>, transform_indices = @transform_7, window_bounds = array<i64: 64, 128>}, {pipeline_mode = #tpu.pipeline_mode<synchronous>, transform_indices = @transform_8, window_bounds = array<i64: 1, 128>}, {transform_indices = @transform_9, window_bounds = array<i64: 8, 6>}]} {
    %c0 = arith.constant 0 : index
    %c0_0 = arith.constant 0 : index
    %0 = vector.load %arg1[%c0, %c0_0] : memref<8x20xf32, #tpu.memory_space<vmem>>, vector<8x20xf32>
    %c0_1 = arith.constant 0 : index
    %c0_2 = arith.constant 0 : index
    %1 = vector.load %arg2[%c0_1, %c0_2] : memref<20x128xf32, #tpu.memory_space<vmem>>, vector<20x128xf32>
    %cst = arith.constant dense<0.000000e+00> : vector<8x128xf32>
    %2 = tpu.matmul %0, %1, %cst {dimension_numbers = #tpu.dot_dimension_numbers<[1], [0], [0], [1], [0, 0, 1, 1], [], []>} : vector<8x20xf32>, vector<20x128xf32>, vector<8x128xf32> -> vector<8x128xf32>
    %c0_3 = arith.constant 0 : index
    %c0_4 = arith.constant 0 : index
    %3 = vector.load %arg3[%c0_3, %c0_4] : memref<1x128xf32, #tpu.memory_space<vmem>>, vector<1x128xf32>
    %4 = vector.broadcast %3 : vector<1x128xf32> to vector<8x128xf32>
    %5 = arith.addf %2, %4 : vector<8x128xf32>
    %cst_5 = arith.constant 0.000000e+00 : f32
    %6 = vector.broadcast %cst_5 : f32 to vector<8x128xf32>
    %7 = arith.maximumf %5, %6 : vector<8x128xf32>
    %c0_6 = arith.constant 0 : index
    %c0_7 = arith.constant 0 : index
    %8 = vector.load %arg4[%c0_6, %c0_7] : memref<128x128xf32, #tpu.memory_space<vmem>>, vector<128x128xf32>
    %cst_8 = arith.constant dense<0.000000e+00> : vector<8x128xf32>
    %9 = tpu.matmul %7, %8, %cst_8 {dimension_numbers = #tpu.dot_dimension_numbers<[1], [0], [0], [1], [0, 0, 1, 1], [], []>} : vector<8x128xf32>, vector<128x128xf32>, vector<8x128xf32> -> vector<8x128xf32>
    %c0_9 = arith.constant 0 : index
    %c0_10 = arith.constant 0 : index
    %10 = vector.load %arg5[%c0_9, %c0_10] : memref<1x128xf32, #tpu.memory_space<vmem>>, vector<1x128xf32>
    %11 = vector.broadcast %10 : vector<1x128xf32> to vector<8x128xf32>
    %12 = arith.addf %9, %11 : vector<8x128xf32>
    %cst_11 = arith.constant 0.000000e+00 : f32
    %13 = vector.broadcast %cst_11 : f32 to vector<8x128xf32>
    %14 = arith.maximumf %12, %13 : vector<8x128xf32>
    %c0_12 = arith.constant 0 : index
    %c0_13 = arith.constant 0 : index
    %15 = vector.load %arg6[%c0_12, %c0_13] : memref<128x64xf32, #tpu.memory_space<vmem>>, vector<128x64xf32>
    %cst_14 = arith.constant dense<0.000000e+00> : vector<8x64xf32>
    %16 = tpu.matmul %14, %15, %cst_14 {dimension_numbers = #tpu.dot_dimension_numbers<[1], [0], [0], [1], [0, 0, 1, 1], [], []>} : vector<8x128xf32>, vector<128x64xf32>, vector<8x64xf32> -> vector<8x64xf32>
    %c0_15 = arith.constant 0 : index
    %c0_16 = arith.constant 0 : index
    %17 = vector.load %arg7[%c0_15, %c0_16] : memref<1x64xf32, #tpu.memory_space<vmem>>, vector<1x64xf32>
    %18 = vector.broadcast %17 : vector<1x64xf32> to vector<8x64xf32>
    %19 = arith.addf %16, %18 : vector<8x64xf32>
    %cst_17 = arith.constant 0.000000e+00 : f32
    %20 = vector.broadcast %cst_17 : f32 to vector<8x64xf32>
    %21 = arith.maximumf %19, %20 : vector<8x64xf32>
    %c0_18 = arith.constant 0 : index
    %c0_19 = arith.constant 0 : index
    %22 = vector.load %arg8[%c0_18, %c0_19] : memref<64x128xf32, #tpu.memory_space<vmem>>, vector<64x128xf32>
    %cst_20 = arith.constant dense<0.000000e+00> : vector<8x128xf32>
    %23 = tpu.matmul %21, %22, %cst_20 {dimension_numbers = #tpu.dot_dimension_numbers<[1], [0], [0], [1], [0, 0, 1, 1], [], []>} : vector<8x64xf32>, vector<64x128xf32>, vector<8x128xf32> -> vector<8x128xf32>
    %c0_21 = arith.constant 0 : index
    %c0_22 = arith.constant 0 : index
    %24 = vector.load %arg9[%c0_21, %c0_22] : memref<1x128xf32, #tpu.memory_space<vmem>>, vector<1x128xf32>
    %25 = vector.broadcast %24 : vector<1x128xf32> to vector<8x128xf32>
    %26 = arith.addf %23, %25 : vector<8x128xf32>
    %27 = vector.extract_strided_slice %26 {offsets = [0, 0], sizes = [8, 6], strides = [1, 1]} : vector<8x128xf32> to vector<8x6xf32>
    %c0_23 = arith.constant 0 : index
    %c0_24 = arith.constant 0 : index
    %28 = vector.load %arg10[%c0_23, %c0_24] : memref<8x6xf32, #tpu.memory_space<vmem>>, vector<8x6xf32>
    tpu.vector_store %arg10[%c0_23, %c0_24], %27 {strides = array<i32>} : memref<8x6xf32, #tpu.memory_space<vmem>>, vector<8x6xf32>,
    return
  }
  func.func @transform_0(%arg0: i32) -> (i32, i32) {
    %c0_i32 = arith.constant 0 : i32
    %c0_i32_0 = arith.constant 0 : i32
    return %arg0, %c0_i32 : i32, i32
  }
  func.func @transform_1(%arg0: i32) -> (i32, i32) {
    %c0_i32 = arith.constant 0 : i32
    %c0_i32_0 = arith.constant 0 : i32
    %c0_i32_1 = arith.constant 0 : i32
    return %c0_i32, %c0_i32_0 : i32, i32
  }
  func.func @transform_2(%arg0: i32) -> (i32, i32) {
    %c0_i32 = arith.constant 0 : i32
    %c0_i32_0 = arith.constant 0 : i32
    %c0_i32_1 = arith.constant 0 : i32
    return %c0_i32, %c0_i32_0 : i32, i32
  }
  func.func @transform_3(%arg0: i32) -> (i32, i32) {
    %c0_i32 = arith.constant 0 : i32
    %c0_i32_0 = arith.constant 0 : i32
    %c0_i32_1 = arith.constant 0 : i32
    return %c0_i32, %c0_i32_0 : i32, i32
  }
  func.func @transform_4(%arg0: i32) -> (i32, i32) {
    %c0_i32 = arith.constant 0 : i32
    %c0_i32_0 = arith.constant 0 : i32
    %c0_i32_1 = arith.constant 0 : i32
    return %c0_i32, %c0_i32_0 : i32, i32
  }
  func.func @transform_5(%arg0: i32) -> (i32, i32) {
    %c0_i32 = arith.constant 0 : i32
    %c0_i32_0 = arith.constant 0 : i32
    %c0_i32_1 = arith.constant 0 : i32
    return %c0_i32, %c0_i32_0 : i32, i32
  }
  func.func @transform_6(%arg0: i32) -> (i32, i32) {
    %c0_i32 = arith.constant 0 : i32
    %c0_i32_0 = arith.constant 0 : i32
    %c0_i32_1 = arith.constant 0 : i32
    return %c0_i32, %c0_i32_0 : i32, i32
  }
  func.func @transform_7(%arg0: i32) -> (i32, i32) {
    %c0_i32 = arith.constant 0 : i32
    %c0_i32_0 = arith.constant 0 : i32
    %c0_i32_1 = arith.constant 0 : i32
    return %c0_i32, %c0_i32_0 : i32, i32
  }
  func.func @transform_8(%arg0: i32) -> (i32, i32) {
    %c0_i32 = arith.constant 0 : i32
    %c0_i32_0 = arith.constant 0 : i32
    %c0_i32_1 = arith.constant 0 : i32
    return %c0_i32, %c0_i32_0 : i32, i32
  }
  func.func @transform_9(%arg0: i32) -> (i32, i32) {
    %c0_i32 = arith.constant 0 : i32
    %c0_i32_0 = arith.constant 0 : i32
    return %arg0, %c0_i32 : i32, i32
  }
}

</mosaic_0001>

<bundles_post_ra>
// kernel: dimension_adaptive_forward.1
= control target key start
LH: loop header
LB: loop body
LE: loop exit
PB: predicated region body
PF: predicated region fallthrough
CT: control target
= control target key end

     0   :  { %14 = vsyncpa [#allocation3], 0  ;;  %v663_v2 = vmov 0.0|0.0   ;;  %vm664_vm0 = vmmov 0   ;;  %v665_v4 = vmov 0.0   ;;  %vm48_vm1 = vcmask 1043456   ;;  %s905_s0 = inlined_call_operand.vmem [shape: f32[2,20], index: 0, kind: input, shape index: {}]   ;;  %s906_s1 = inlined_call_operand.vmem [shape: f32[20,128], index: 1, kind: input, shape index: {}]   ;;  %s907_s2 = inlined_call_operand.vmem [shape: f32[1,128], index: 2, kind: input, shape index: {}]   ;;  %s908_s3 = inlined_call_operand.vmem [shape: f32[128,128], index: 3, kind: input, shape index: {}]   ;;  %s909_s4 = inlined_call_operand.vmem [shape: f32[1,128], index: 4, kind: input, shape index: {}]   ;;  %s910_s5 = inlined_call_operand.vmem [shape: f32[128,64], index: 5, kind: input, shape index: {}]   ;;  %s911_s6 = inlined_call_operand.vmem [shape: f32[1,64], index: 6, kind: input, shape index: {}]   ;;  %s912_s7 = inlined_call_operand.vmem [shape: f32[64,128], index: 7, kind: input, shape index: {}]   ;;  %s913_s8 = inlined_call_operand.vmem [shape: f32[1,128], index: 8, kind: input, shape index: {}]   ;;  %s914_s9 = inlined_call_operand.hbm [shape: f32[2,6], index: 9, kind: output, shape index: {}]  }
   0x1   :  { %v34_v0 = vld [vmem:[%s906_s1] sm:$0xff]  ;;  %v35_v1 = vld [vmem:[%s906_s1 + $0x8] sm:$0xff]  ;;  %570 = vmatprep.subr.bf16.mxu0 %v663_v2  ;;  %573 = vmatprep.subr.bf16.mxu1 %v663_v2  ;;  %v125_v7 = vld [vmem:[%s908_s3 + $0x10] sm:$0xff]  ;;  %vm44_vm2 = vcmask 162816   ;;  %vm326_vm3 = vcmask 523264   ;;  %vm400_vm4 = vcmask 48128  }
   0x2   :  { %v571_v3 = vpack.c.bf16 %v35_v1, %v34_v0  ;;  %478 = vmatprep.mubr.msk.f32.mxu0 %vm664_vm0, %v665_v4  ;;  %v123_v5 = vld [vmem:[%s908_s3] sm:$0xff]  ;;  %v124_v6 = vld [vmem:[%s908_s3 + $0x8] sm:$0xff]  ;;  %513 = vmatprep.mubr.msk.f32.mxu1 %vm664_vm0, %v665_v4  ;;  %v126_v9 = vld [vmem:[%s908_s3 + $0x18] sm:$0xff] }
   0x3   :  { %v574_v8 = vpack.c.bf16 %v124_v6, %v123_v5  ;;  %v36_v10 = vld [vmem:[%s906_s1 + $0x10] sm:$0xf]  ;;  %v33_v11 = vld [vmem:[%s905_s0] sm:$0xff]  ;;  %v577_v12 = vpack.c.bf16 %v126_v9, %v125_v7  ;;  %v128_v14 = vld [vmem:[%s908_s3 + $0x28] sm:$0xff] }
   0x4   :  { %572 = vmatpush3.bf16.msra.mxu0 %v571_v3  ;;  %v127_v13 = vld [vmem:[%s908_s3 + $0x20] sm:$0xff]  ;;  %v129_v16 = vld [vmem:[%s908_s3 + $0x30] sm:$0xff]  ;;  %v130_v17 = vld [vmem:[%s908_s3 + $0x38] sm:$0xff] }
   0x5   :  { %476 = vmatprep.subr.mxu0 %v665_v4  ;;  %575 = vmatpush3.bf16.msra.mxu1 %v574_v8  ;;  %v580_v15 = vpack.c.bf16 %v128_v14, %v127_v13  ;;  %v583_v18 = vpack.c.bf16 %v130_v17, %v129_v16  ;;  %v131_v19 = vld [vmem:[%s908_s3 + $0x40] sm:$0xff]  ;;  %v132_v20 = vld [vmem:[%s908_s3 + $0x48] sm:$0xff]  ;;  %v133_v22 = vld [vmem:[%s908_s3 + $0x50] sm:$0xff] }
   0x6   :  { %576 = vmatprep.subr.bf16.mxu1 %v663_v2  ;;  %v586_v21 = vpack.c.bf16 %v132_v20, %v131_v19  ;;  %v134_v23 = vld [vmem:[%s908_s3 + $0x58] sm:$0xff]  ;;  %v135_v25 = vld [vmem:[%s908_s3 + $0x60] sm:$0xff]  ;;  %v136_v26 = vld [vmem:[%s908_s3 + $0x68] sm:$0xff] }
   0x7   :  { %v589_v24 = vpack.c.bf16 %v134_v23, %v133_v22  ;;  %v592_v27 = vpack.c.bf16 %v136_v26, %v135_v25  ;;  %v137_v28 = vld [vmem:[%s908_s3 + $0x70] sm:$0xff]  ;;  %v138_v29 = vld [vmem:[%s908_s3 + $0x78] sm:$0xff]  ;;  %v217_v31 = vld [vmem:[%s910_s5] sm:$0xff] }
   0x8   :  { %477 = vmatpush3.msk.msra.mxu0 %vm48_vm1, %v36_v10  ;;  %v595_v30 = vpack.c.bf16 %v138_v29, %v137_v28  ;;  %v218_v32 = vld [vmem:[%s910_s5 + $0x8] sm:$0xff]  ;;  %v219_v33 = vld [vmem:[%s910_s5 + $0x10] sm:$0xff]  ;;  %v220_v35 = vld [vmem:[%s910_s5 + $0x18] sm:$0xff] }
   0x9   :  { %479 = vmatmul.mubr.msk.f32.vlgmr.msra.gmra.mrb[0].mxu0 %vm44_vm2, %v33_v11  ;;  %597 = vmatprep.subr.bf16.mxu0 %v663_v2  ;;  %v598_v34 = vpack.c.bf16 %v218_v32, %v217_v31  ;;  %v601_v36 = vpack.c.bf16 %v220_v35, %v219_v33  ;;  %v221_v37 = vld [vmem:[%s910_s5 + $0x20] sm:$0xff]  ;;  %v222_v38 = vld [vmem:[%s910_s5 + $0x28] sm:$0xff]  ;;  %v223_v40 = vld [vmem:[%s910_s5 + $0x30] sm:$0xff] }
   0xa   :  { %578 = vmatpush3.bf16.msra.mxu1 %v577_v12  ;;  %548 = vmatprep.mubr.msk.f32.mxu0 %vm664_vm0, %v665_v4  ;;  %v604_v39 = vpack.c.bf16 %v222_v38, %v221_v37  ;;  %v224_v41 = vld [vmem:[%s910_s5 + $0x38] sm:$0xff]  ;;  %v225_v43 = vld [vmem:[%s910_s5 + $0x40] sm:$0xff]  ;;  %v226_v44 = vld [vmem:[%s910_s5 + $0x48] sm:$0xff] }
   0xb   :  { %579 = vmatprep.subr.bf16.mxu1 %v663_v2  ;;  %599 = vmatpush3.bf16.msra.mxu0 %v598_v34  ;;  %v607_v42 = vpack.c.bf16 %v224_v41, %v223_v40  ;;  %v610_v45 = vpack.c.bf16 %v226_v44, %v225_v43  ;;  %v227_v46 = vld [vmem:[%s910_s5 + $0x50] sm:$0xff]  ;;  %v228_v47 = vld [vmem:[%s910_s5 + $0x58] sm:$0xff]  ;;  %v229_v49 = vld [vmem:[%s910_s5 + $0x60] sm:$0xff] }
   0xc   :  { %600 = vmatprep.subr.bf16.mxu0 %v663_v2  ;;  %v613_v48 = vpack.c.bf16 %v228_v47, %v227_v46  ;;  %v230_v50 = vld [vmem:[%s910_s5 + $0x68] sm:$0xff]  ;;  %v418_v52 = vld [vmem:[%s907_s2] ss:$0 sm:$0xff]  ;;  %v231_v57 = vld [vmem:[%s910_s5 + $0x70] sm:$0xff] }
   0xd   :  { %v616_v51 = vpack.c.bf16 %v230_v50, %v229_v49  ;;  %v232_v58 = vld [vmem:[%s910_s5 + $0x78] sm:$0xff]  ;;  %v311_v60 = vld [vmem:[%s912_s7] sm:$0xff]  ;;  %v312_v61 = vld [vmem:[%s912_s7 + $0x8] sm:$0xff] }
   0xe   :  { %581 = vmatpush3.bf16.msra.mxu1 %v580_v15  ;;  %v619_v59 = vpack.c.bf16 %v232_v58, %v231_v57  ;;  %v313_v62 = vld [vmem:[%s912_s7 + $0x10] sm:$0xff]  ;;  %v622_v63 = vpack.c.bf16 %v312_v61, %v311_v60  ;;  %v314_v0 = vld [vmem:[%s912_s7 + $0x18] sm:$0xff]  ;;  %v315_v3 = vld [vmem:[%s912_s7 + $0x20] sm:$0xff] }
   0xf   :  { %582 = vmatprep.subr.bf16.mxu1 %v663_v2  ;;  %602 = vmatpush3.bf16.msra.mxu0 %v601_v36  ;;  %v625_v1 = vpack.c.bf16 %v314_v0, %v313_v62  ;;  %v421_v6 = vld [vmem:[%s909_s4] ss:$0 sm:$0xff]  ;;  %v317_v11 = vld [vmem:[%s912_s7 + $0x30] sm:$0xff]  ;;  %v318_v12 = vld [vmem:[%s912_s7 + $0x38] sm:$0xff] }
  0x10   :  { %603 = vmatprep.subr.bf16.mxu0 %v663_v2  ;;  %v631_v13 = vpack.c.bf16 %v318_v12, %v317_v11 }
  0x12   :  { %584 = vmatpush3.bf16.msra.mxu1 %v583_v18  ;;  %v423_v18 = vld [vmem:[%s913_s8] ss:$0 sm:$0xff] }
  0x13   :  { %585 = vmatprep.subr.bf16.mxu1 %v663_v2  ;;  %605 = vmatpush3.bf16.msra.mxu0 %v604_v39 }
  0x14   :  { %606 = vmatprep.subr.bf16.mxu0 %v663_v2 }
  0x16   :  { %587 = vmatpush3.bf16.msra.mxu1 %v586_v21 }
  0x17   :  { %588 = vmatprep.subr.bf16.mxu1 %v663_v2  ;;  %608 = vmatpush3.bf16.msra.mxu0 %v607_v42 }
  0x18   :  { %609 = vmatprep.subr.bf16.mxu0 %v663_v2 }
  0x1a   :  { %590 = vmatpush3.bf16.msra.mxu1 %v589_v24 }
  0x1b   :  { %591 = vmatprep.subr.bf16.mxu1 %v663_v2  ;;  %611 = vmatpush3.bf16.msra.mxu0 %v610_v45 }
  0x1c   :  { %612 = vmatprep.subr.bf16.mxu0 %v663_v2 }
  0x1e   :  { %593 = vmatpush3.bf16.msra.mxu1 %v592_v27 }
  0x1f   :  { %594 = vmatprep.subr.bf16.mxu1 %v663_v2  ;;  %614 = vmatpush3.bf16.msra.mxu0 %v613_v48 }
  0x20   :  { %615 = vmatprep.subr.bf16.mxu0 %v663_v2 }
  0x22   :  { %596 = vmatpush3.bf16.msra.mxu1 %v595_v30 }
  0x23   :  { %621 = vmatprep.subr.bf16.mxu1 %v663_v2  ;;  %617 = vmatpush3.bf16.msra.mxu0 %v616_v51 }
  0x24   :  { %618 = vmatprep.subr.bf16.mxu0 %v663_v2 }
  0x27   :  { %620 = vmatpush3.bf16.msra.mxu0 %v619_v59 }
  0xdc   :  { %v118_v53 = vpop.f32.mrb[0].mxu0 }
  0xdd   :  { %v119_v54 = vadd.f32 %v418_v52, %v118_v53  ;;  %v480_v55 = vpop.f32.mrb[1].mxu0 }
  0xdf   :  { %v122_v56 = vmax.f32 %v119_v54, 0.0 }
  0xe1   :  { %514 = vmatmul.mubr.f32.vlgmr.msra.gmra.mrb[0].mxu1 %v122_v56 }
  0xe2   :  { %567 = vmatprep.mubr.msk.f32.mxu1 %vm664_vm0, %v665_v4  ;;  %623 = vmatpush3.bf16.msra.mxu1 %v622_v63  ;;  %v316_v4 = vld [vmem:[%s912_s7 + $0x28] sm:$0xff] }
  0xe3   :  { %624 = vmatprep.subr.bf16.mxu1 %v663_v2  ;;  %v628_v5 = vpack.c.bf16 %v316_v4, %v315_v3 }
  0xe6   :  { %626 = vmatpush3.bf16.msra.mxu1 %v625_v1 }
  0xe7   :  { %627 = vmatprep.subr.bf16.mxu1 %v663_v2 }
  0xea   :  { %629 = vmatpush3.bf16.msra.mxu1 %v628_v5 }
  0xeb   :  { %630 = vmatprep.subr.bf16.mxu1 %v663_v2  ;;  %v422_v2 = vld [vmem:[%s911_s6] ss:$0 sm:$0xff] }
  0xee   :  { %632 = vmatpush3.bf16.msra.mxu1 %v631_v13 }
 0x1b4   :  { %v212_v7 = vpop.f32.mrb[0].mxu1 }
 0x1b5   :  { %v213_v8 = vadd.f32 %v421_v6, %v212_v7  ;;  %v515_v9 = vpop.f32.mrb[1].mxu1 }
 0x1b7   :  { %v216_v10 = vmax.f32 %v213_v8, 0.0 }
 0x1b9   :  { %549 = vmatmul.mubr.f32.vlgmr.msra.gmra.mrb[2].mxu0 %v216_v10 }
 0x28c   :  { %v306_v14 = vpop.f32.mrb[2].mxu0 }
 0x28d   :  { %v307_v15 = vadd.f32 %v422_v2, %v306_v14  ;;  %v550_v16 = vpop.f32.mrb[3].mxu0 }
 0x28f   :  { %v310_v17 = vmax.f32 %v307_v15, 0.0 }
 0x291   :  { %568 = vmatmul.mubr.msk.f32.vlgmr.msra.gmra.mrb[2].mxu1 %vm326_vm3, %v310_v17 }
 0x364   :  { %v396_v19 = vpop.f32.mrb[2].mxu1 }
 0x365   :  { %v397_v20 = vadd.f32 %v423_v18, %v396_v19  ;;  %v569_v21 = vpop.f32.mrb[3].mxu1 }
 0x367   :  { %401 = vst.msk [vmem:[#allocation2] sm:$0xff] %vm400_vm4, %v397_v20 }
 0x368   :  { %406 = vsyncadd [#allocation3], 96  ;;  %s666_s7 = smov [#allocation2]  }
 0x369   :  { %s407_s29 = sshll.u32 %s666_s7, 4  ;;  %s408_s29 = int_to_ptr.vmem [resolvable:$true] %s407_s29 }
 0x36a   :  { %s639_s6 = scalar_lea.vmem %s408_s29, 32  ;;  %s643_s30 = scalar_lea.vmem %s408_s29, 128 }
 0x36b   :  { %p640_p0 = scmp.ne.s32.totalorder %s408_s29, %s639_s6  ;;  %p644_p1 = scmp.lt.s32.totalorder %s408_s29, %s408_s29 }
 0x36c   :  { %p645_p2 = scmp.lt.s32.totalorder %s643_s30, %s639_s6 }
 0x36e   :  { %p646_p3 = por %p645_p2, %p644_p1 }
 0x370   :  { %p647_p4 = pnand %p646_p3, %p640_p0 }
 0x372   :  { %650 = shalt.err (!%p647_p4)
}
 0x373   :  { %s651_s8 = scalar_lea.hbm %s914_s9, 32 }
 0x374   :  { %p652_p5 = scmp.ne.s32.totalorder %s914_s9, %s651_s8  ;;  %p655_p6 = scmp.lt.u32.totalorder %s651_s8, %s914_s9 }
 0x376   :  { %p657_p7 = pnand %p655_p6, %p652_p5 }
 0x378   :  { %660 = shalt.err (!%p657_p7)
}
 0x379   :  { %s667_s14 = smov 32   ;;  %s668_s15 = smov 2  }
 0x37a   :  { %413 = dma.vmem_to_hbm [thread:$0]  %s408_s29, 32, %s914_s9, [#allocation3], %s667_s14, %s667_s14, %s668_s15  }
 0x37b   :  { %661 = dma.done.wait [#allocation3], 128  }
 0x37c   :  { %662 = vsyncadd [#allocation3], 4294967168 }
 0x37d   :  { %417 = vsyncpa [#allocation3], 1 }

</bundles_post_ra>
